<compile_context>
chip_gen: v7x
topology: tpu7x:2x2x1
jax: 0.10.0
libtpu: 0.0.40
codegen_flags: <defaults>
</compile_context>

<pallas_src>
import jax
import jax.numpy as jnp
from jax.experimental import pallas as pl
from jax.experimental.pallas import tpu as pltpu

LANE = 128
SUBLANE = 8
TILE_B_MAX = 2048  # rows / grid step; x tile @ S=16 f32 is ~128 KiB, far below VMEM limits.


def _round_up(n, m):
    return ((n + m - 1) // m) * m


def _auto_tile_b(B):
    """Multiple of 8, capped at TILE_B_MAX, and >= 2 grid steps whenever B allows
    (so both v7x TensorCores get work under dimension_semantics=('parallel',))."""
    b8 = _round_up(max(int(B), 1), SUBLANE)
    if b8 <= SUBLANE:
        return SUBLANE
    half = _round_up((b8 + 1) // 2, SUBLANE)
    return min(TILE_B_MAX, half)


def prepare_params(params):
    """Pad/cast the (tiny) weights once, off the forward hot path.

    params = (w1, b1, w2, b2) with w1:(S,H) b1:(H,) w2:(H,A) b2:(A,).
    Hidden dim is zero-padded to a multiple of 128 lanes (free: weights are
    VMEM-resident); state and action dims are left unpadded on purpose.
    """
    w1, b1, w2, b2 = params
    f32 = jnp.float32
    S, H = w1.shape
    A = w2.shape[1]
    Hp = _round_up(max(H, LANE), LANE)
    w1_p = jnp.zeros((S, Hp), f32).at[:, :H].set(w1.astype(f32))
    b1_p = jnp.zeros((1, Hp), f32).at[0, :H].set(b1.astype(f32))
    w2_p = jnp.zeros((Hp, A), f32).at[:H, :].set(w2.astype(f32))
    b2_p = b2.astype(f32).reshape(1, A)
    return w1_p, b1_p, w2_p, b2_p


def _mlp_kernel(x_ref, w1_ref, b1_ref, w2_ref, b2_ref, q_ref):
    x = x_ref[...].astype(jnp.float32)           # upcast if streamed as bf16
    h = jnp.dot(x, w1_ref[...], preferred_element_type=jnp.float32) + b1_ref[...]
    h = jnp.maximum(h, 0.0)
    q = jnp.dot(h, w2_ref[...], preferred_element_type=jnp.float32) + b2_ref[...]
    q_ref[...] = q.astype(q_ref.dtype)


def _mlp_gather_kernel(x_ref, w1_ref, b1_ref, w2_ref, b2_ref, act_ref, out_ref):
    x = x_ref[...].astype(jnp.float32)
    h = jnp.dot(x, w1_ref[...], preferred_element_type=jnp.float32) + b1_ref[...]
    h = jnp.maximum(h, 0.0)
    q = jnp.dot(h, w2_ref[...], preferred_element_type=jnp.float32) + b2_ref[...]
    # torch.gather(q, 1, action): one-hot masked row-reduce; q never hits HBM.
    # TODO(synk): out-of-range actions yield 0.0 here instead of torch.gather's error.
    a = act_ref[...]                                        # (tile_b, 1) int32
    col = jax.lax.broadcasted_iota(jnp.int32, q.shape, 1)   # (tile_b, A)
    gathered = jnp.sum(jnp.where(col == a, q, 0.0), axis=1, keepdims=True)
    out_ref[...] = gathered.astype(out_ref.dtype)


def agent_network_forward(x, params, action=None, *, tile_b=None, io_dtype=None):
    """x:(B,S); params = prepare_params(...) (raw (w1,b1,w2,b2) also accepted);
    action:(B,1) int optional; io_dtype e.g. jnp.bfloat16 to halve x HBM traffic
    on v6e/v7x (compute stays f32)."""
    if params[1].ndim == 1:          # raw params passed — pad/cast on the fly
        params = prepare_params(params)
    w1_p, b1_p, w2_p, b2_p = params
    B, S = x.shape
    Hp = w1_p.shape[1]
    A = w2_p.shape[1]

    if io_dtype is not None and x.dtype != io_dtype:
        x = x.astype(io_dtype)

    if tile_b is None:
        tile_b = _auto_tile_b(B)
    tile_b = max(SUBLANE, _round_up(min(int(tile_b), _round_up(B, SUBLANE)), SUBLANE))
    B_pad = _round_up(B, tile_b)
    grid = (B_pad // tile_b,)

    x_in = x if B_pad == B else jnp.zeros((B_pad, S), x.dtype).at[:B].set(x)

    # x block last dim == full array dim (S) -> legal without 128-lane padding.
    x_spec = pl.BlockSpec((tile_b, S), lambda i: (i, 0))
    w1_spec = pl.BlockSpec((S, Hp), lambda i: (0, 0))    # VMEM-resident across grid
    b1_spec = pl.BlockSpec((1, Hp), lambda i: (0, 0))
    w2_spec = pl.BlockSpec((Hp, A), lambda i: (0, 0))
    b2_spec = pl.BlockSpec((1, A), lambda i: (0, 0))
    cparams = pltpu.CompilerParams(dimension_semantics=("parallel",))

    if action is None:
        q = pl.pallas_call(
            _mlp_kernel,
            grid=grid,
            out_shape=jax.ShapeDtypeStruct((B_pad, A), jnp.float32),
            in_specs=[x_spec, w1_spec, b1_spec, w2_spec, b2_spec],
            out_specs=pl.BlockSpec((tile_b, A), lambda i: (i, 0)),
            compiler_params=cparams,
        )(x_in, w1_p, b1_p, w2_p, b2_p)
        return q if B_pad == B else q[:B]

    act = action.astype(jnp.int32).reshape(B, 1)
    act_in = act if B_pad == B else jnp.zeros((B_pad, 1), jnp.int32).at[:B].set(act)
    act_spec = pl.BlockSpec((tile_b, 1), lambda i: (i, 0))

    out = pl.pallas_call(
        _mlp_gather_kernel,
        grid=grid,
        out_shape=jax.ShapeDtypeStruct((B_pad, 1), jnp.float32),
        in_specs=[x_spec, w1_spec, b1_spec, w2_spec, b2_spec, act_spec],
        out_specs=pl.BlockSpec((tile_b, 1), lambda i: (i, 0)),
        compiler_params=cparams,
    )(x_in, w1_p, b1_p, w2_p, b2_p, act_in)
    return out if B_pad == B else out[:B]


def init_params(key, state_dim, hidden_dim, action_space_size):
    """Deterministic init mimicking PyTorch nn.Linear's U(-1/sqrt(fan_in), 1/sqrt(fan_in))."""
    k1, k2, k3, k4 = jax.random.split(key, 4)
    lim1 = 1.0 / jnp.sqrt(state_dim)
    lim2 = 1.0 / jnp.sqrt(hidden_dim)
    w1 = jax.random.uniform(k1, (state_dim, hidden_dim), jnp.float32, -lim1, lim1)
    b1 = jax.random.uniform(k2, (hidden_dim,), jnp.float32, -lim1, lim1)
    w2 = jax.random.uniform(k3, (hidden_dim, action_space_size), jnp.float32, -lim2, lim2)
    b2 = jax.random.uniform(k4, (action_space_size,), jnp.float32, -lim2, lim2)
    return w1, b1, w2, b2


def _reference_forward(x, params, action=None):
    w1, b1, w2, b2 = params
    h = jnp.maximum(x @ w1 + b1, 0.0)
    q = h @ w2 + b2
    if action is not None:
        return jnp.take_along_axis(q, action.astype(jnp.int32).reshape(-1, 1), axis=1)
    return q


if __name__ == "__main__":
    state_dim, hidden_dim, action_space_size = 16, 32, 8

    key = jax.random.PRNGKey(0)
    kx, ka, kp, kx2, ka2 = jax.random.split(key, 5)
    raw_params = init_params(kp, state_dim, hidden_dim, action_space_size)
    params = prepare_params(raw_params)   # pad/cast ONCE, off the forward hot path

    # Small case (original demo shapes), grid = 1 step.
    batch = 8
    x = jax.random.normal(kx, (batch, state_dim), jnp.float32)
    action = jax.random.randint(ka, (batch, 1), 0, action_space_size, jnp.int32)

    q = jax.block_until_ready(agent_network_forward(x, params))
    q_sel = jax.block_until_ready(agent_network_forward(x, params, action))
    assert q.shape == (batch, action_space_size)
    assert q_sel.shape == (batch, 1)
    assert jnp.allclose(q, _reference_forward(x, raw_params), atol=1e-5, rtol=1e-5)
    assert jnp.allclose(q_sel, _reference_forward(x, raw_params, action), atol=1e-5, rtol=1e-5)

    # Larger ragged batch: auto tile picks >= 2 grid steps (v7x megacore) + batch padding.
    batch2 = 300
    x2 = jax.random.normal(kx2, (batch2, state_dim), jnp.float32)
    action2 = jax.random.randint(ka2, (batch2, 1), 0, action_space_size, jnp.int32)
    q2 = jax.block_until_ready(agent_network_forward(x2, params))
    q2_sel = jax.block_until_ready(agent_network_forward(x2, params, action2))
    assert q2.shape == (batch2, action_space_size)
    assert q2_sel.shape == (batch2, 1)
    assert jnp.allclose(q2, _reference_forward(x2, raw_params), atol=1e-5, rtol=1e-5)
    assert jnp.allclose(q2_sel, _reference_forward(x2, raw_params, action2), atol=1e-5, rtol=1e-5)

    # bf16 streaming of x (v6e/v7x HBM win); compute stays f32 in-kernel.
    q2_bf16 = jax.block_until_ready(
        agent_network_forward(x2, params, io_dtype=jnp.bfloat16))
    ref_bf16 = _reference_forward(x2.astype(jnp.bfloat16).astype(jnp.float32), raw_params)
    assert jnp.allclose(q2_bf16, ref_bf16, atol=1e-2, rtol=1e-2)

    print("KERNEL_OK")
</pallas_src>

<mosaic_0001>
module attributes {stable_mosaic.version = 11 : i64} {
  func.func @_mlp_kernel(%arg0: i32, %arg1: memref<8x16xf32, #tpu.memory_space<vmem>>, %arg2: memref<16x128xf32, #tpu.memory_space<vmem>>, %arg3: memref<1x128xf32, #tpu.memory_space<vmem>>, %arg4: memref<128x8xf32, #tpu.memory_space<vmem>>, %arg5: memref<1x8xf32, #tpu.memory_space<vmem>>, %arg6: memref<8x8xf32, #tpu.memory_space<vmem>>) attributes {dimension_semantics = [#tpu.dimension_semantics<parallel>], iteration_bounds = array<i64: 1>, scalar_prefetch = 0 : i64, scratch_operands = 0 : i64, tpu.core_type = #tpu.core_type<tc>, window_params = [{transform_indices = @transform_0, window_bounds = array<i64: 8, 16>}, {pipeline_mode = #tpu.pipeline_mode<synchronous>, transform_indices = @transform_1, window_bounds = array<i64: 16, 128>}, {pipeline_mode = #tpu.pipeline_mode<synchronous>, transform_indices = @transform_2, window_bounds = array<i64: 1, 128>}, {pipeline_mode = #tpu.pipeline_mode<synchronous>, transform_indices = @transform_3, window_bounds = array<i64: 128, 8>}, {pipeline_mode = #tpu.pipeline_mode<synchronous>, transform_indices = @transform_4, window_bounds = array<i64: 1, 8>}, {transform_indices = @transform_5, window_bounds = array<i64: 8, 8>}]} {
    %c0 = arith.constant 0 : index
    %c0_0 = arith.constant 0 : index
    %0 = vector.load %arg1[%c0, %c0_0] : memref<8x16xf32, #tpu.memory_space<vmem>>, vector<8x16xf32>
    %c0_1 = arith.constant 0 : index
    %c0_2 = arith.constant 0 : index
    %1 = vector.load %arg2[%c0_1, %c0_2] : memref<16x128xf32, #tpu.memory_space<vmem>>, vector<16x128xf32>
    %cst = arith.constant dense<0.000000e+00> : vector<8x128xf32>
    %2 = tpu.matmul %0, %1, %cst {dimension_numbers = #tpu.dot_dimension_numbers<[1], [0], [0], [1], [0, 0, 1, 1], [], []>} : vector<8x16xf32>, vector<16x128xf32>, vector<8x128xf32> -> vector<8x128xf32>
    %c0_3 = arith.constant 0 : index
    %c0_4 = arith.constant 0 : index
    %3 = vector.load %arg3[%c0_3, %c0_4] : memref<1x128xf32, #tpu.memory_space<vmem>>, vector<1x128xf32>
    %4 = vector.broadcast %3 : vector<1x128xf32> to vector<8x128xf32>
    %5 = arith.addf %2, %4 : vector<8x128xf32>
    %cst_5 = arith.constant 0.000000e+00 : f32
    %6 = vector.broadcast %cst_5 : f32 to vector<8x128xf32>
    %7 = arith.maximumf %5, %6 : vector<8x128xf32>
    %c0_6 = arith.constant 0 : index
    %c0_7 = arith.constant 0 : index
    %8 = vector.load %arg4[%c0_6, %c0_7] : memref<128x8xf32, #tpu.memory_space<vmem>>, vector<128x8xf32>
    %cst_8 = arith.constant dense<0.000000e+00> : vector<8x8xf32>
    %9 = tpu.matmul %7, %8, %cst_8 {dimension_numbers = #tpu.dot_dimension_numbers<[1], [0], [0], [1], [0, 0, 1, 1], [], []>} : vector<8x128xf32>, vector<128x8xf32>, vector<8x8xf32> -> vector<8x8xf32>
    %c0_9 = arith.constant 0 : index
    %c0_10 = arith.constant 0 : index
    %10 = vector.load %arg5[%c0_9, %c0_10] : memref<1x8xf32, #tpu.memory_space<vmem>>, vector<1x8xf32>
    %11 = vector.broadcast %10 : vector<1x8xf32> to vector<8x8xf32>
    %12 = arith.addf %9, %11 : vector<8x8xf32>
    %c0_11 = arith.constant 0 : index
    %c0_12 = arith.constant 0 : index
    %13 = vector.load %arg6[%c0_11, %c0_12] : memref<8x8xf32, #tpu.memory_space<vmem>>, vector<8x8xf32>
    tpu.vector_store %arg6[%c0_11, %c0_12], %12 {strides = array<i32>} : memref<8x8xf32, #tpu.memory_space<vmem>>, vector<8x8xf32>,
    return
  }
  func.func @transform_0(%arg0: i32) -> (i32, i32) {
    %c0_i32 = arith.constant 0 : i32
    %c0_i32_0 = arith.constant 0 : i32
    return %arg0, %c0_i32 : i32, i32
  }
  func.func @transform_1(%arg0: i32) -> (i32, i32) {
    %c0_i32 = arith.constant 0 : i32
    %c0_i32_0 = arith.constant 0 : i32
    %c0_i32_1 = arith.constant 0 : i32
    return %c0_i32, %c0_i32_0 : i32, i32
  }
  func.func @transform_2(%arg0: i32) -> (i32, i32) {
    %c0_i32 = arith.constant 0 : i32
    %c0_i32_0 = arith.constant 0 : i32
    %c0_i32_1 = arith.constant 0 : i32
    return %c0_i32, %c0_i32_0 : i32, i32
  }
  func.func @transform_3(%arg0: i32) -> (i32, i32) {
    %c0_i32 = arith.constant 0 : i32
    %c0_i32_0 = arith.constant 0 : i32
    %c0_i32_1 = arith.constant 0 : i32
    return %c0_i32, %c0_i32_0 : i32, i32
  }
  func.func @transform_4(%arg0: i32) -> (i32, i32) {
    %c0_i32 = arith.constant 0 : i32
    %c0_i32_0 = arith.constant 0 : i32
    %c0_i32_1 = arith.constant 0 : i32
    return %c0_i32, %c0_i32_0 : i32, i32
  }
  func.func @transform_5(%arg0: i32) -> (i32, i32) {
    %c0_i32 = arith.constant 0 : i32
    %c0_i32_0 = arith.constant 0 : i32
    return %arg0, %c0_i32 : i32, i32
  }
}

</mosaic_0001>

<bundles_post_ra>
// kernel: tpu_custom_call.1
= control target key start
LH: loop header
LB: loop body
LE: loop exit
PB: predicated region body
PF: predicated region fallthrough
CT: control target
= control target key end

     0   :  { %v335_v2 = vmov 0.0|0.0   ;;  %vm336_vm0 = vmmov 0   ;;  %v337_v4 = vmov 0.0   ;;  %vm31_vm1 = vcmask 130048   ;;  %s444_s0 = inlined_call_operand.vmem [shape: f32[8,16], index: 0, kind: input, shape index: {}]   ;;  %s445_s1 = inlined_call_operand.vmem [shape: f32[16,128], index: 1, kind: input, shape index: {}]   ;;  %s446_s2 = inlined_call_operand.vmem [shape: f32[1,128], index: 2, kind: input, shape index: {}]   ;;  %s447_s3 = inlined_call_operand.vmem [shape: f32[128,8], index: 3, kind: input, shape index: {}]   ;;  %s448_s4 = inlined_call_operand.vmem [shape: f32[1,8], index: 4, kind: input, shape index: {}]   ;;  %s449_s5 = inlined_call_operand.hbm [shape: f32[8,8], index: 5, kind: output, shape index: {}]  }
   0x1   :  { %v22_v0 = vld [vmem:[%s445_s1] sm:$0xff]  ;;  %v23_v1 = vld [vmem:[%s445_s1 + $0x8] sm:$0xff]  ;;  %280 = vmatprep.subr.bf16.mxu0 %v335_v2  ;;  %242 = vmatprep.mubr.msk.f32.mxu0 %vm336_vm0, %v337_v4  ;;  %v108_v7 = vld [vmem:[%s447_s3 + $0x10] sm:$0xff] }
   0x2   :  { %v281_v3 = vpack.c.bf16 %v23_v1, %v22_v0  ;;  %v106_v5 = vld [vmem:[%s447_s3] sm:$0xff]  ;;  %v107_v6 = vld [vmem:[%s447_s3 + $0x8] sm:$0xff]  ;;  %283 = vmatprep.subr.bf16.mxu1 %v335_v2  ;;  %v109_v9 = vld [vmem:[%s447_s3 + $0x18] sm:$0xff]  ;;  %277 = vmatprep.mubr.msk.f32.mxu1 %vm336_vm0, %v337_v4 }
   0x3   :  { %v284_v8 = vpack.c.bf16 %v107_v6, %v106_v5  ;;  %v21_v10 = vld [vmem:[%s444_s0] sm:$0xff]  ;;  %v287_v11 = vpack.c.bf16 %v109_v9, %v108_v7  ;;  %v111_v13 = vld [vmem:[%s447_s3 + $0x28] sm:$0xff] }
   0x4   :  { %282 = vmatpush3.bf16.msra.mxu0 %v281_v3  ;;  %v110_v12 = vld [vmem:[%s447_s3 + $0x20] sm:$0xff] }
   0x5   :  { %285 = vmatpush3.bf16.msra.mxu1 %v284_v8 }
   0x6   :  { %286 = vmatprep.subr.bf16.mxu1 %v335_v2 }
   0x7   :  { %243 = vmatmul.mubr.msk.f32.vlgmr.msra.gmra.mrb[0].mxu0 %vm31_vm1, %v21_v10 }
   0x8   :  { %10 = vsyncpa [#allocation3], 0  ;;  %v290_v14 = vpack.c.bf16 %v111_v13, %v110_v12  ;;  %v112_v15 = vld [vmem:[%s447_s3 + $0x30] sm:$0xff]  ;;  %v113_v16 = vld [vmem:[%s447_s3 + $0x38] sm:$0xff]  ;;  %s338_s7 = smov [#allocation2]   ;;  %vm199_vm2 = vcmask 64512  }
   0x9   :  { %288 = vmatpush3.bf16.msra.mxu1 %v287_v11  ;;  %v293_v17 = vpack.c.bf16 %v113_v16, %v112_v15  ;;  %v114_v18 = vld [vmem:[%s447_s3 + $0x40] sm:$0xff]  ;;  %v115_v19 = vld [vmem:[%s447_s3 + $0x48] sm:$0xff]  ;;  %v116_v21 = vld [vmem:[%s447_s3 + $0x50] sm:$0xff]  ;;  %s207_s8 = sshll.u32 %s338_s7, 4  ;;  %s208_s8 = int_to_ptr.vmem [resolvable:$true] %s207_s8 }
   0xa   :  { %289 = vmatprep.subr.bf16.mxu1 %v335_v2  ;;  %v296_v20 = vpack.c.bf16 %v115_v19, %v114_v18  ;;  %v117_v22 = vld [vmem:[%s447_s3 + $0x58] sm:$0xff]  ;;  %v118_v24 = vld [vmem:[%s447_s3 + $0x60] sm:$0xff]  ;;  %v119_v25 = vld [vmem:[%s447_s3 + $0x68] sm:$0xff]  ;;  %p316_p1 = scmp.lt.s32.totalorder %s208_s8, %s208_s8 }
   0xb   :  { %v299_v23 = vpack.c.bf16 %v117_v22, %v116_v21  ;;  %v302_v26 = vpack.c.bf16 %v119_v25, %v118_v24  ;;  %v120_v27 = vld [vmem:[%s447_s3 + $0x70] sm:$0xff]  ;;  %v121_v28 = vld [vmem:[%s447_s3 + $0x78] sm:$0xff]  ;;  %v215_v30 = vld [vmem:[%s446_s2] ss:$0 sm:$0xff]  ;;  %s311_s3 = scalar_lea.vmem %s208_s8, 128 }
   0xc   :  { %v305_v29 = vpack.c.bf16 %v121_v28, %v120_v27  ;;  %v217_v35 = vld [vmem:[%s448_s4] ss:$0 sm:$0xff]  ;;  %p312_p0 = scmp.ne.s32.totalorder %s208_s8, %s311_s3  ;;  %p317_p2 = scmp.lt.s32.totalorder %s311_s3, %s311_s3 }
   0xd   :  { %291 = vmatpush3.bf16.msra.mxu1 %v290_v14 }
   0xe   :  { %292 = vmatprep.subr.bf16.mxu1 %v335_v2  ;;  %p318_p3 = por %p317_p2, %p316_p1 }
  0x10   :  { %p319_p4 = pnand %p318_p3, %p312_p0 }
  0x11   :  { %294 = vmatpush3.bf16.msra.mxu1 %v293_v17 }
  0x12   :  { %295 = vmatprep.subr.bf16.mxu1 %v335_v2 }
  0x15   :  { %297 = vmatpush3.bf16.msra.mxu1 %v296_v20 }
  0x16   :  { %298 = vmatprep.subr.bf16.mxu1 %v335_v2 }
  0x19   :  { %300 = vmatpush3.bf16.msra.mxu1 %v299_v23 }
  0x1a   :  { %301 = vmatprep.subr.bf16.mxu1 %v335_v2 }
  0x1d   :  { %303 = vmatpush3.bf16.msra.mxu1 %v302_v26 }
  0x1e   :  { %304 = vmatprep.subr.bf16.mxu1 %v335_v2 }
  0x21   :  { %306 = vmatpush3.bf16.msra.mxu1 %v305_v29 }
  0xda   :  { %v101_v31 = vpop.f32.mrb[0].mxu0 }
  0xdb   :  { %v102_v32 = vadd.f32 %v215_v30, %v101_v31  ;;  %v244_v33 = vpop.f32.mrb[1].mxu0 }
  0xdd   :  { %v105_v34 = vmax.f32 %v102_v32, 0.0 }
  0xdf   :  { %278 = vmatmul.mubr.f32.vlgmr.msra.gmra.mrb[0].mxu1 %v105_v34 }
 0x1b2   :  { %v195_v36 = vpop.f32.mrb[0].mxu1 }
 0x1b3   :  { %v196_v37 = vadd.f32 %v217_v35, %v195_v36  ;;  %v279_v38 = vpop.f32.mrb[1].mxu1 }
 0x1b5   :  { %200 = vst.msk [vmem:[#allocation2] sm:$0xff] %vm199_vm2, %v196_v37 }
 0x1b6   :  { %322 = shalt.err (!%p319_p4)
}
 0x1b7   :  { %s323_s10 = scalar_lea.hbm %s449_s5, 128 }
 0x1b8   :  { %p324_p5 = scmp.ne.s32.totalorder %s449_s5, %s323_s10  ;;  %p327_p6 = scmp.lt.u32.totalorder %s323_s10, %s449_s5 }
 0x1ba   :  { %p329_p7 = pnand %p327_p6, %p324_p5 }
 0x1bc   :  { %332 = shalt.err (!%p329_p7)
}
 0x1bd   :  { %210 = dma.vmem_to_hbm [thread:$0]  %s208_s8, 128, %s449_s5, [#allocation3]  }
 0x1be   :  { %333 = dma.done.wait [#allocation3], 128  }
 0x1bf   :  { %334 = vsyncadd [#allocation3], 4294967168 }
 0x1c0   :  { %214 = vsyncpa [#allocation3], 1 }

</bundles_post_ra>
